<compile_context>
chip_gen: v5e
topology: v5e:2x2
jax: 0.10.0
libtpu: 0.0.40
codegen_flags: <defaults>
</compile_context>

<pallas_src>
import jax
import jax.numpy as jnp
from jax.experimental import pallas as pl
from jax.experimental.pallas import tpu as pltpu

_WIDE_LANES = 1024              # lane-dense slab width for large batches (multiple of 128)
_NARROW_LANES = 128             # one f32 vreg row, for small batches
_TARGET_BLOCK_BYTES = 4 << 20   # ~4 MiB/block; 4 double-buffered slabs = 16 MiB VMEM
_VMEM_LIMIT_BYTES = 32 << 20    # fits v5e/v6e (128 MiB phys) and v7x (64 MiB phys) with headroom


def _fma_kernel(ac_ref, x_ref, o_ref):
    # ac_ref: (2,) f32 in SMEM -> [slope a, offset c]  (single scalar operand).
    # x_ref / o_ref: (tile_rows, L) lane-dense f32 slabs -> pure VPU FMA with
    # full-width unmasked loads/stores; no MXU involvement.
    o_ref[...] = x_ref[...] * ac_ref[0] + ac_ref[1]


def _choose_layout(n):
    """Pick (lane_width, padded_len, rows, tile_rows) for a batch of n scalars."""
    lanes = _WIDE_LANES if n >= 8 * _WIDE_LANES else _NARROW_LANES
    padded = -(-n // lanes) * lanes                    # pad only to the lane width
    rows = padded // lanes
    target_rows = max(8, _TARGET_BLOCK_BYTES // (4 * lanes))   # ~4 MiB blocks
    tile_rows = min(rows, target_rows)
    if tile_rows != rows:
        tile_rows = (tile_rows // 8) * 8               # (8,128) block-shape alignment
    elif rows >= 16:
        # Keep >= 2 grid steps so ("parallel",) can shard across both v7x TCs.
        tile_rows = ((-(-rows // 2)) + 7) // 8 * 8
    return lanes, padded, rows, tile_rows


def linear_regression_forward(x, w1, b1, w2, b2):
    """x: (N, 1) f32 ; returns (N, 1) f32 — matches PyTorch module semantics."""
    n = x.shape[0]

    # --- Algebraic fusion of the two linear layers (done once, in plain JAX) ---
    a = jnp.dot(w1, w2).reshape(())                    # scalar slope
    c = (jnp.dot(b1, w2) + b2).reshape(())             # scalar offset
    ac = jnp.stack([a, c]).astype(jnp.float32)         # single (2,) SMEM operand

    # --- Lane-dense slab: pad only to a lane-width multiple, no full scatter ---
    lanes, padded, rows, tile_rows = _choose_layout(n)
    x_flat = x.reshape(-1).astype(jnp.float32)
    if padded != n:
        x_flat = jnp.pad(x_flat, (0, padded - n))
    x2d = x_flat.reshape(rows, lanes)

    grid = (pl.cdiv(rows, tile_rows),)                 # edge block masked by Pallas
    slab_spec = pl.BlockSpec((tile_rows, lanes), lambda i: (i, 0))

    out2d = pl.pallas_call(
        _fma_kernel,
        out_shape=jax.ShapeDtypeStruct((rows, lanes), jnp.float32),
        grid=grid,
        in_specs=[pl.BlockSpec(memory_space=pltpu.MemorySpace.SMEM), slab_spec],
        out_specs=slab_spec,
        compiler_params=pltpu.CompilerParams(
            dimension_semantics=("parallel",),          # batch tiles are independent
            vmem_limit_bytes=_VMEM_LIMIT_BYTES,
        ),
        cost_estimate=pl.CostEstimate(
            flops=2 * padded,            # one mul + one add per element
            transcendentals=0,
            bytes_accessed=8 * padded,   # f32 read + f32 write
        ),
    )(ac, x2d)

    # Strip lane padding; restore exact (N, 1) semantics.
    # TODO(synk): callers that can consume a padded (rows, lanes) slab should take
    # out2d directly to avoid this extra HBM read+write of the output.
    out_flat = out2d.reshape(-1)
    if padded != n:
        out_flat = out_flat[:n]
    return out_flat.reshape(n, 1)


def init_params(key):
    """Deterministic init mirroring PyTorch nn.Linear default: U(-1/sqrt(fan_in), 1/sqrt(fan_in))."""
    k1, k2, k3, k4 = jax.random.split(key, 4)
    # fc1: in=1, out=20
    bound1 = 1.0 / jnp.sqrt(1.0)
    w1 = jax.random.uniform(k1, (1, 20), jnp.float32, -bound1, bound1)   # (in, out)
    b1 = jax.random.uniform(k2, (1, 20), jnp.float32, -bound1, bound1)
    # fc2: in=20, out=1
    bound2 = 1.0 / jnp.sqrt(20.0)
    w2 = jax.random.uniform(k3, (20, 1), jnp.float32, -bound2, bound2)   # (in, out)
    b2 = jax.random.uniform(k4, (1, 1), jnp.float32, -bound2, bound2)
    return w1, b1, w2, b2


if __name__ == "__main__":
    key = jax.random.PRNGKey(0)
    pkey, xkey1, xkey2 = jax.random.split(key, 3)
    w1, b1, w2, b2 = init_params(pkey)

    # Primary small case, shape (8, 1) — consistent with Linear(1, 20).
    x = jax.random.normal(xkey1, (8, 1), jnp.float32)
    out = linear_regression_forward(x, w1, b1, w2, b2)
    out = jax.block_until_ready(out)
    ref = (x @ w1 + b1) @ w2 + b2
    assert out.shape == (8, 1)
    assert jnp.allclose(out, ref, atol=1e-5, rtol=1e-5)

    # Secondary case exercising lane padding, the masked edge block and a 2-step grid.
    x2 = jax.random.normal(xkey2, (2000, 1), jnp.float32)
    out2 = jax.block_until_ready(linear_regression_forward(x2, w1, b1, w2, b2))
    ref2 = (x2 @ w1 + b1) @ w2 + b2
    assert out2.shape == (2000, 1)
    assert jnp.allclose(out2, ref2, atol=1e-5, rtol=1e-5)

    print("KERNEL_OK")
</pallas_src>

<mosaic_0001>
module attributes {stable_mosaic.version = 11 : i64} {
  func.func @_fma_kernel(%arg0: i32, %arg1: memref<2xf32, #tpu.memory_space<smem>>, %arg2: memref<1x128xf32, #tpu.memory_space<vmem>>, %arg3: memref<1x128xf32, #tpu.memory_space<vmem>>) attributes {dimension_semantics = [#tpu.dimension_semantics<parallel>], iteration_bounds = array<i64: 1>, scalar_prefetch = 0 : i64, scratch_operands = 0 : i64, tpu.core_type = #tpu.core_type<tc>, window_params = [{transform_indices = @transform_0, window_bounds = array<i64: 2>}, {transform_indices = @transform_1, window_bounds = array<i64: 1, 128>}, {transform_indices = @transform_2, window_bounds = array<i64: 1, 128>}]} {
    %c0 = arith.constant 0 : index
    %c0_0 = arith.constant 0 : index
    %0 = vector.load %arg2[%c0, %c0_0] : memref<1x128xf32, #tpu.memory_space<vmem>>, vector<1x128xf32>
    %c0_1 = arith.constant 0 : index
    %1 = memref.load %arg1[%c0_1] : memref<2xf32, #tpu.memory_space<smem>>
    %2 = vector.broadcast %1 : f32 to vector<1x128xf32>
    %3 = arith.mulf %0, %2 : vector<1x128xf32>
    %c1 = arith.constant 1 : index
    %4 = memref.load %arg1[%c1] : memref<2xf32, #tpu.memory_space<smem>>
    %5 = vector.broadcast %4 : f32 to vector<1x128xf32>
    %6 = arith.addf %3, %5 : vector<1x128xf32>
    %c0_2 = arith.constant 0 : index
    %c0_3 = arith.constant 0 : index
    %7 = vector.load %arg3[%c0_2, %c0_3] : memref<1x128xf32, #tpu.memory_space<vmem>>, vector<1x128xf32>
    tpu.vector_store %arg3[%c0_2, %c0_3], %6 {strides = array<i32>} : memref<1x128xf32, #tpu.memory_space<vmem>>, vector<1x128xf32>,
    return
  }
  func.func @transform_0(%arg0: i32) -> i32 {
    %c0_i32 = arith.constant 0 : i32
    %c0_i32_0 = arith.constant 0 : i32
    return %c0_i32 : i32
  }
  func.func @transform_1(%arg0: i32) -> (i32, i32) {
    %c0_i32 = arith.constant 0 : i32
    %c0_i32_0 = arith.constant 0 : i32
    return %arg0, %c0_i32 : i32, i32
  }
  func.func @transform_2(%arg0: i32) -> (i32, i32) {
    %c0_i32 = arith.constant 0 : i32
    %c0_i32_0 = arith.constant 0 : i32
    return %arg0, %c0_i32 : i32, i32
  }
}

</mosaic_0001>

<bundles_post_ra>
// kernel: tpu_custom_call.1
= control target key start
LH: loop header
LB: loop body
LE: loop exit
PB: predicated region body
PF: predicated region fallthrough
CT: control target
= control target key end

     0   :  { %7 = vsyncpa [#allocation5], 0  ;;  %s162_s0 = inlined_call_operand.hbm [shape: f32[2], index: 0, kind: input, shape index: {}]   ;;  %s163_s1 = inlined_call_operand.hbm [shape: f32[1,128], index: 1, kind: input, shape index: {}]   ;;  %s164_s2 = inlined_call_operand.hbm [shape: f32[1,128], index: 2, kind: output, shape index: {}]  }
   0x1   :  { %8 = vsyncpa [#allocation3], 0 }
   0x2   :  { %9 = vsyncpa [#allocation4], 0  ;;  %s15_s11 = sshll.u32 %s162_s0, 4  ;;  %s24_s14 = sshll.u32 %s163_s1, 4  ;;  %s16_s11 = int_to_ptr.hbm [resolvable:$true] %s15_s11  ;;  %s25_s14 = int_to_ptr.hbm [resolvable:$true] %s24_s14 }
   0x3   :  { %s135_s15 = smov [#allocation2]   ;;  %s136_s16 = smov [#allocation6]  }
   0x4   :  { %18 = dma.hbm_to_smem %s16_s11, 16, %s135_s15, [#allocation5]  }
   0x5   :  { %s26_s17 = sshll.u32 %s136_s16, 4  ;;  %s27_s17 = int_to_ptr.vmem [resolvable:$true] %s26_s17 }
   0x6   :  { %29 = dma.hbm_to_vmem [thread:$0]  %s25_s14, 16, %s27_s17, [#allocation3]  }
   0x7   :  { %129 = dma.done.wait [#allocation5], 16  }
   0x8   :  { %130 = vsyncadd [#allocation5], 4294967280 }
   0x9   :  { %131 = dma.done.wait [#allocation3], 16  }
   0xa   :  { %132 = vsyncadd [#allocation3], 4294967280 }
   0xb   :  { %38 = sfence }
   0xc   :  { %s40_s18 = sld [smem:[#allocation2]]  ;;  %v39_v0 = vld [vmem:[#allocation6] sm:$0x1]  ;;  %s137_s0 = smov [#allocation7]  }
   0xd   :  { %s65_s19 = sld [smem:[#allocation2 + $0x1]]  ;;  %s52_s20 = sshll.u32 %s137_s0, 4  ;;  %s53_s20 = int_to_ptr.vmem [resolvable:$true] %s52_s20 }
   0xe   :  { %s54_s22 = sshll.u32 %s164_s2, 4  ;;  %s55_s22 = int_to_ptr.hbm [resolvable:$true] %s54_s22 }
  0x12   :  { %v41_v1 = vstv %s40_s18 }
  0x13   :  { %v42_v2 = vmul.f32 %v41_v1, %v39_v0  ;;  %v44_v3 = vstv %s65_s19 }
  0x15   :  { %v45_v4 = vadd.f32 %v44_v3, %v42_v2 }
  0x17   :  { %46 = vst [vmem:[#allocation7] sm:$0x1] %v45_v4 }
  0x18   :  { %57 = dma.vmem_to_hbm [thread:$0]  %s53_s20, 16, %s55_s22, [#allocation4]  }
  0x19   :  { %133 = dma.done.wait [#allocation4], 16  }
  0x1a   :  { %134 = vsyncadd [#allocation4], 4294967280 }
  0x1b   :  { %62 = vsyncpa [#allocation3], 1 }
  0x1c   :  { %63 = vsyncpa [#allocation4], 1 }
  0x1d   :  { %64 = vsyncpa [#allocation5], 1 }

</bundles_post_ra>
